<compile_context>
chip_gen: v7x
topology: tpu7x:2x2x1
jax: 0.10.0
libtpu: 0.0.40
codegen_flags: <defaults>
</compile_context>

<pallas_src>
import functools

import jax
import jax.numpy as jnp
from jax.experimental import pallas as pl
from jax.experimental.pallas import tpu as pltpu


def _cdiv(a, b):
    return -(-a // b)


def _round_up(x, m):
    return _cdiv(x, m) * m


def classifier_kernel(x_ref, w_ref, b_ref, o_ref, acc_ref, *, d_total, d_tile, mask_d):
    # x_ref: (tb, tk) VMEM   w_ref: (1, tk) VMEM   b_ref: (1,) SMEM
    # o_ref: (tb, 1)         acc_ref: (tb, 1) f32 scratch
    k = pl.program_id(1)

    @pl.when(k == 0)
    def _():
        acc_ref[...] = jnp.zeros_like(acc_ref)

    x = x_ref[...].astype(jnp.float32)
    w = w_ref[...].astype(jnp.float32)               # (1, tk), broadcasts over rows
    p = x * w
    if mask_d:
        # Ragged last D chunk: zero out-of-range columns (OOB reads are garbage).
        col = jax.lax.broadcasted_iota(jnp.int32, p.shape, 1) + k * d_tile
        p = jnp.where(col < d_total, p, 0.0)
    # Linear(feature_dim, 1): row-wise dot = VPU multiply + XLU lane reduction.
    acc_ref[...] += jnp.sum(p, axis=-1, keepdims=True)

    @pl.when(k == pl.num_programs(1) - 1)
    def _():
        s = acc_ref[...] + b_ref[0]
        # Sigmoid: exp on the EUP, approximate reciprocal also on the EUP.
        o_ref[...] = pl.reciprocal(1.0 + jnp.exp(-s), approx=True).astype(o_ref.dtype)


def _tpu_hw_params():
    """(per-core VMEM bytes, #TensorCores) with conservative fallbacks."""
    vmem_cap = 64 << 20          # v7x per-core VMEM = smallest current generation
    n_cores = 1
    try:
        info = pltpu.get_tpu_info()
        cap = getattr(info, "vmem_capacity_bytes", None)
        if cap:
            vmem_cap = int(cap)
        for attr in ("num_tensorcores", "tensorcore_count", "num_cores", "cores_per_chip"):
            val = getattr(info, attr, None)
            if val:
                n_cores = max(n_cores, int(val))
                break
    except Exception:
        pass
    try:
        n_cores = max(n_cores, int(getattr(jax.devices()[0], "num_cores", 1) or 1))
    except Exception:
        pass
    return vmem_cap, min(max(n_cores, 1), 2)


_ROW_FLOOR = 1024   # don't shrink batch tiles below this before chunking D


def _plan_tiles(B, D, x_itemsize, out_itemsize, vmem_cap, n_cores):
    sublane = 16 if x_itemsize < 4 else 8
    budget = (vmem_cap * 3) // 8                     # bytes reserved for pipelined buffers
    # (tb, 1) blocks occupy a full 128-lane tile in VMEM -> count them padded.
    fixed_per_row = 2 * 128 * out_itemsize + 128 * 4

    def rows_for(tk):
        per_row = 2 * tk * x_itemsize + fixed_per_row
        return max(sublane, (budget // per_row) // sublane * sublane)

    tk = D
    tb = rows_for(D)
    if tb < _ROW_FLOOR:
        # Feature dim too wide for a tall batch tile: chunk D on an "arbitrary" axis.
        tb = _ROW_FLOOR
        tk_bytes = budget // tb - fixed_per_row
        tk = max(128, (tk_bytes // (2 * x_itemsize)) // 128 * 128)
        tk = min(tk, D)
    # Never use a taller tile than the (sublane-rounded) batch.
    tb = min(tb, _round_up(B, sublane))
    if n_cores > 1:
        # Multi-TensorCore chip: make sure every core gets at least one batch tile.
        while tb > sublane and _cdiv(B, tb) < n_cores:
            tb = max(sublane, (tb // 2) // sublane * sublane)
    return tb, tk, sublane


def classifier_forward(x, w, b):
    """Eval-mode Classifier forward: sigmoid(x @ w.T + b).

    x: [B, D] (f32 or bf16), w: [1, D], b: scalar / [1] / [1, 1]  ->  [B, 1] in x.dtype
    """
    B, D = x.shape
    assert w.shape == (1, D), w.shape
    b = jnp.asarray(b, dtype=jnp.float32).reshape((1,))

    x_itemsize = jnp.dtype(x.dtype).itemsize
    w_itemsize = jnp.dtype(w.dtype).itemsize
    out_dtype = x.dtype
    out_itemsize = jnp.dtype(out_dtype).itemsize

    vmem_cap, n_cores = _tpu_hw_params()
    tb, tk, _ = _plan_tiles(B, D, x_itemsize, out_itemsize, vmem_cap, n_cores)

    grid_b = _cdiv(B, tb)
    grid_k = _cdiv(D, tk)
    mask_d = (D % tk) != 0

    # Conservative VMEM accounting (double-buffered x/w/out + f32 accumulator,
    # with (tb, 1) blocks counted at their lane-padded (tb, 128) size).
    x_block = tb * tk * x_itemsize
    w_block = 8 * _round_up(tk, 128) * w_itemsize
    o_block = tb * 128 * out_itemsize
    acc_block = tb * 128 * 4
    needed = 2 * (x_block + w_block + o_block) + acc_block + (2 << 20)
    vmem_limit = min(max(needed, 32 << 20), (vmem_cap * 3) // 4)
    vmem_limit = int(max(vmem_limit, needed))

    cost = pl.CostEstimate(
        flops=int(2 * B * D),
        transcendentals=int(B),
        bytes_accessed=int(B * D * x_itemsize + D * w_itemsize + B * out_itemsize),
    )

    kernel = functools.partial(classifier_kernel, d_total=D, d_tile=tk, mask_d=mask_d)

    return pl.pallas_call(
        kernel,
        out_shape=jax.ShapeDtypeStruct((B, 1), out_dtype),
        grid_spec=pltpu.PrefetchScalarGridSpec(
            num_scalar_prefetch=0,
            grid=(grid_b, grid_k),
            in_specs=[
                pl.BlockSpec((tb, tk), lambda i, k: (i, k)),          # x tile (VMEM)
                pl.BlockSpec((1, tk), lambda i, k: (0, k)),           # weight chunk (VMEM)
                pl.BlockSpec(memory_space=pltpu.MemorySpace.SMEM),    # bias scalar (SMEM)
            ],
            out_specs=pl.BlockSpec((tb, 1), lambda i, k: (i, 0)),
            scratch_shapes=[pltpu.VMEM((tb, 1), jnp.float32)],
        ),
        compiler_params=pltpu.CompilerParams(
            dimension_semantics=("parallel", "arbitrary"),
            vmem_limit_bytes=vmem_limit,
        ),
        cost_estimate=cost,
    )(x, w, b)


if __name__ == "__main__":
    key = jax.random.PRNGKey(0)
    kx, kw, kb = jax.random.split(key, 3)

    B = 300                 # deliberately not a tile multiple (exercises the ragged block)
    feature_dim = 128

    # Deterministic inputs / params (PyTorch Linear default: U(-1/sqrt(D), 1/sqrt(D)))
    x = jax.random.normal(kx, (B, feature_dim), dtype=jnp.float32)
    bound = 1.0 / (feature_dim ** 0.5)
    w = jax.random.uniform(kw, (1, feature_dim), minval=-bound, maxval=bound,
                           dtype=jnp.float32)
    b = jax.random.uniform(kb, (1, 1), minval=-bound, maxval=bound,
                           dtype=jnp.float32)

    scores = classifier_forward(x, w, b)
    scores = jax.block_until_ready(scores)

    # Pure-JAX reference (eval-mode dropout = identity).  Tolerance covers the
    # EUP approximate reciprocal (~1e-4 relative) used for the sigmoid.
    ref = jax.nn.sigmoid(x @ w.T + b)
    assert scores.shape == (B, 1)
    assert jnp.allclose(scores, ref, atol=2e-3, rtol=2e-3), (
        "max abs err = %g" % float(jnp.max(jnp.abs(scores - ref))))

    print("KERNEL_OK")
</pallas_src>

<mosaic_0001>
module attributes {stable_mosaic.version = 11 : i64} {
  func.func @classifier_kernel(%arg0: i32, %arg1: i32, %arg2: memref<304x128xf32, #tpu.memory_space<vmem>>, %arg3: memref<1x128xf32, #tpu.memory_space<vmem>>, %arg4: memref<1xf32, #tpu.memory_space<smem>>, %arg5: memref<304x1xf32, #tpu.memory_space<vmem>>, %arg6: memref<304x1xf32, #tpu.memory_space<vmem>>) attributes {dimension_semantics = [#tpu.dimension_semantics<parallel>, #tpu.dimension_semantics<arbitrary>], iteration_bounds = array<i64: 1, 1>, scalar_prefetch = 0 : i64, scratch_operands = 1 : i64, tpu.core_type = #tpu.core_type<tc>, window_params = [{transform_indices = @transform_0, window_bounds = array<i64: 304, 128>}, {transform_indices = @transform_1, window_bounds = array<i64: 1, 128>}, {transform_indices = @transform_2, window_bounds = array<i64: 1>}, {transform_indices = @transform_3, window_bounds = array<i64: 304, 1>}]} {
    %c0_i32 = arith.constant 0 : i32
    %0 = arith.cmpi eq, %arg1, %c0_i32 : i32
    %1 = arith.extui %0 : i1 to i32
    %c0_i32_0 = arith.constant 0 : i32
    %2 = arith.cmpi ne, %1, %c0_i32_0 : i32
    scf.if %2 {
      %cst_10 = arith.constant 0.000000e+00 : f32
      %15 = vector.broadcast %cst_10 : f32 to vector<304x1xf32>
      %c0_11 = arith.constant 0 : index
      %c0_12 = arith.constant 0 : index
      %16 = vector.load %arg6[%c0_11, %c0_12] : memref<304x1xf32, #tpu.memory_space<vmem>>, vector<304x1xf32>
      tpu.vector_store %arg6[%c0_11, %c0_12], %15 {strides = array<i32>} : memref<304x1xf32, #tpu.memory_space<vmem>>, vector<304x1xf32>,
    } else {
    }
    %c0 = arith.constant 0 : index
    %c0_1 = arith.constant 0 : index
    %3 = vector.load %arg2[%c0, %c0_1] : memref<304x128xf32, #tpu.memory_space<vmem>>, vector<304x128xf32>
    %c0_2 = arith.constant 0 : index
    %c0_3 = arith.constant 0 : index
    %4 = vector.load %arg3[%c0_2, %c0_3] : memref<1x128xf32, #tpu.memory_space<vmem>>, vector<1x128xf32>
    %5 = vector.broadcast %4 : vector<1x128xf32> to vector<304x128xf32>
    %6 = arith.mulf %3, %5 : vector<304x128xf32>
    %c0_4 = arith.constant 0 : index
    %c0_5 = arith.constant 0 : index
    %7 = vector.load %arg6[%c0_4, %c0_5] : memref<304x1xf32, #tpu.memory_space<vmem>>, vector<304x1xf32>
    %cst = arith.constant dense<0.000000e+00> : vector<304xf32>
    %8 = vector.multi_reduction <add>, %6, %cst [1] : vector<304x128xf32> to vector<304xf32>
    %9 = vector.shape_cast %8 : vector<304xf32> to vector<304x1xf32>
    %10 = arith.addf %7, %9 : vector<304x1xf32>
    %c0_6 = arith.constant 0 : index
    %c0_7 = arith.constant 0 : index
    %11 = vector.load %arg6[%c0_6, %c0_7] : memref<304x1xf32, #tpu.memory_space<vmem>>, vector<304x1xf32>
    tpu.vector_store %arg6[%c0_6, %c0_7], %10 {strides = array<i32>} : memref<304x1xf32, #tpu.memory_space<vmem>>, vector<304x1xf32>,
    %c0_i32_8 = arith.constant 0 : i32
    %12 = arith.cmpi eq, %arg1, %c0_i32_8 : i32
    %13 = arith.extui %12 : i1 to i32
    %c0_i32_9 = arith.constant 0 : i32
    %14 = arith.cmpi ne, %13, %c0_i32_9 : i32
    scf.if %14 {
      %c0_10 = arith.constant 0 : index
      %c0_11 = arith.constant 0 : index
      %15 = vector.load %arg6[%c0_10, %c0_11] : memref<304x1xf32, #tpu.memory_space<vmem>>, vector<304x1xf32>
      %c0_12 = arith.constant 0 : index
      %16 = memref.load %arg4[%c0_12] : memref<1xf32, #tpu.memory_space<smem>>
      %17 = vector.broadcast %16 : f32 to vector<304x1xf32>
      %18 = arith.addf %15, %17 : vector<304x1xf32>
      %cst_13 = arith.constant 0.000000e+00 : f32
      %19 = vector.broadcast %cst_13 : f32 to vector<304x1xf32>
      %20 = arith.subf %19, %18 : vector<304x1xf32>
      %21 = math.exp %20 : vector<304x1xf32>
      %cst_14 = arith.constant 1.000000e+00 : f32
      %22 = vector.broadcast %cst_14 : f32 to vector<304x1xf32>
      %23 = arith.addf %22, %21 : vector<304x1xf32>
      %24 = tpu.reciprocal %23 {approx = true} : vector<304x1xf32> -> vector<304x1xf32>
      %c0_15 = arith.constant 0 : index
      %c0_16 = arith.constant 0 : index
      %25 = vector.load %arg5[%c0_15, %c0_16] : memref<304x1xf32, #tpu.memory_space<vmem>>, vector<304x1xf32>
      tpu.vector_store %arg5[%c0_15, %c0_16], %24 {strides = array<i32>} : memref<304x1xf32, #tpu.memory_space<vmem>>, vector<304x1xf32>,
    } else {
    }
    return
  }
  func.func @transform_0(%arg0: i32, %arg1: i32) -> (i32, i32) {
    %c0_i32 = arith.constant 0 : i32
    return %arg0, %arg1 : i32, i32
  }
  func.func @transform_1(%arg0: i32, %arg1: i32) -> (i32, i32) {
    %c0_i32 = arith.constant 0 : i32
    %c0_i32_0 = arith.constant 0 : i32
    return %c0_i32, %arg1 : i32, i32
  }
  func.func @transform_2(%arg0: i32, %arg1: i32) -> i32 {
    %c0_i32 = arith.constant 0 : i32
    %c0_i32_0 = arith.constant 0 : i32
    return %c0_i32 : i32
  }
  func.func @transform_3(%arg0: i32, %arg1: i32) -> (i32, i32) {
    %c0_i32 = arith.constant 0 : i32
    %c0_i32_0 = arith.constant 0 : i32
    return %arg0, %c0_i32 : i32, i32
  }
}

</mosaic_0001>

<bundles_post_ra>
// kernel: tpu_custom_call.1
= control target key start
LH: loop header
LB: loop body
LE: loop exit
PB: predicated region body
PF: predicated region fallthrough
CT: control target
= control target key end

     0   :  { %9 = vsyncpa [#allocation5], 0  ;;  %s841_s12 = smov [#allocation4]   ;;  %s1191_s0 = inlined_call_operand.hbm [shape: f32[300,128], index: 0, kind: input, shape index: {}]   ;;  %s1192_s1 = inlined_call_operand.vmem [shape: f32[1,128], index: 1, kind: input, shape index: {}]   ;;  %s1193_s2 = inlined_call_operand.<no memory space> [shape: f32[1], index: 2, kind: input, shape index: {}]   ;;  %s1194_s3 = inlined_call_operand.vmem [shape: f32[300,1], index: 3, kind: output, shape index: {}]  }
   0x1   :  { %s15_s13 = sshll.u32 %s841_s12, 4  ;;  %s817_s16 = scalar_lea.hbm %s1191_s0, 4864  ;;  %s16_s13 = int_to_ptr.vmem [resolvable:$true] %s15_s13 }
   0x2   :  { %p818_p0 = scmp.ne.s32.totalorder %s1191_s0, %s817_s16  ;;  %p821_p1 = scmp.lt.u32.totalorder %s817_s16, %s1191_s0 }
   0x4   :  { %p823_p2 = pnand %p821_p1, %p818_p0 }
   0x6   :  { %826 = shalt.err (!%p823_p2)
}
   0x7   :  { %s827_s21 = scalar_lea.vmem %s16_s13, 4864  ;;  %p832_p4 = scmp.lt.s32.totalorder %s16_s13, %s16_s13 }
   0x8   :  { %p828_p3 = scmp.ne.s32.totalorder %s16_s13, %s827_s21  ;;  %p833_p5 = scmp.lt.s32.totalorder %s827_s21, %s827_s21 }
   0xa   :  { %p834_p6 = por %p833_p5, %p832_p4 }
   0xc   :  { %p835_p7 = pnand %p834_p6, %p828_p3 }
   0xe   :  { %838 = shalt.err (!%p835_p7)
}
   0xf   :  { %s842_s22 = smov 128   ;;  %s843_s23 = smov 8  }
  0x10   :  { %21 = dma.hbm_to_vmem [thread:$0]  %s1191_s0, 4864, %s16_s13, [#allocation5], %s842_s22, %s842_s22, %s843_s23  }
  0x11   :  { %839 = dma.done.wait [#allocation5], 4864  }
  0x12   :  { %840 = vsyncadd [#allocation5], 4294962432  ;;  %vm33_vm0 = vcmask 7168   ;;  %v844_v0 = vmov 0.0   ;;  %v74_v1 = vld [vmem:[#allocation4 + $0x10] sm:$0xff]  ;;  %v72_v3 = vld [vmem:[#allocation4] sm:$0xff] }
  0x13   :  { %36 = vst.msk [vmem:[#allocation2 + $0x10] sm:$0xff] %vm33_vm0, %v844_v0  ;;  %34 = vst.msk [vmem:[#allocation2] sm:$0xff] %vm33_vm0, %v844_v0  ;;  %v918_v2 = vld [vmem:[%s1192_s1] ss:$0 sm:$0xff]  ;;  %v75_v6 = vld [vmem:[#allocation4 + $0x18] sm:$0xff] }
  0x14   :  { %35 = vst.msk [vmem:[#allocation2 + $0x8] sm:$0xff] %vm33_vm0, %v844_v0  ;;  %37 = vst.msk [vmem:[#allocation2 + $0x18] sm:$0xff] %vm33_vm0, %v844_v0  ;;  %v119_v4 = vmul.f32 %v918_v2, %v74_v1  ;;  %v117_v5 = vmul.f32 %v918_v2, %v72_v3  ;;  %v73_v7 = vld [vmem:[#allocation4 + $0x8] sm:$0xff]  ;;  %v120_v8 = vmul.f32 %v918_v2, %v75_v6  ;;  %v76_v11 = vld [vmem:[#allocation4 + $0x20] sm:$0xff] }
  0x15   :  { %38 = vst.msk [vmem:[#allocation2 + $0x20] sm:$0xff] %vm33_vm0, %v844_v0  ;;  %39 = vst.msk [vmem:[#allocation2 + $0x28] sm:$0xff] %vm33_vm0, %v844_v0  ;;  %v118_v9 = vmul.f32 %v918_v2, %v73_v7  ;;  %v77_v10 = vld [vmem:[#allocation4 + $0x28] sm:$0xff]  ;;  %v121_v13 = vmul.f32 %v918_v2, %v76_v11  ;;  %v79_v14 = vld [vmem:[#allocation4 + $0x38] sm:$0xff] }
  0x16   :  { %40 = vst.msk [vmem:[#allocation2 + $0x30] sm:$0xff] %vm33_vm0, %v844_v0  ;;  %41 = vst.msk [vmem:[#allocation2 + $0x38] sm:$0xff] %vm33_vm0, %v844_v0  ;;  %197 = vadd.xlane.f32.xlu1 %v119_v4  ;;  %193 = vadd.xlane.f32.xlu0 %v117_v5  ;;  %v122_v12 = vmul.f32 %v918_v2, %v77_v10  ;;  %v78_v15 = vld [vmem:[#allocation4 + $0x30] sm:$0xff]  ;;  %v124_v16 = vmul.f32 %v918_v2, %v79_v14  ;;  %v81_v18 = vld [vmem:[#allocation4 + $0x48] sm:$0xff] }
  0x17   :  { %42 = vst.msk [vmem:[#allocation2 + $0x40] sm:$0xff] %vm33_vm0, %v844_v0  ;;  %43 = vst.msk [vmem:[#allocation2 + $0x48] sm:$0xff] %vm33_vm0, %v844_v0  ;;  %v123_v17 = vmul.f32 %v918_v2, %v78_v15  ;;  %v80_v19 = vld [vmem:[#allocation4 + $0x40] sm:$0xff]  ;;  %v126_v20 = vmul.f32 %v918_v2, %v81_v18  ;;  %v83_v22 = vld [vmem:[#allocation4 + $0x58] sm:$0xff] }
  0x18   :  { %44 = vst.msk [vmem:[#allocation2 + $0x50] sm:$0xff] %vm33_vm0, %v844_v0  ;;  %45 = vst.msk [vmem:[#allocation2 + $0x58] sm:$0xff] %vm33_vm0, %v844_v0  ;;  %v125_v21 = vmul.f32 %v918_v2, %v80_v19  ;;  %v82_v23 = vld [vmem:[#allocation4 + $0x50] sm:$0xff]  ;;  %v128_v24 = vmul.f32 %v918_v2, %v83_v22  ;;  %v85_v26 = vld [vmem:[#allocation4 + $0x68] sm:$0xff] }
  0x19   :  { %46 = vst.msk [vmem:[#allocation2 + $0x60] sm:$0xff] %vm33_vm0, %v844_v0  ;;  %47 = vst.msk [vmem:[#allocation2 + $0x68] sm:$0xff] %vm33_vm0, %v844_v0  ;;  %v127_v25 = vmul.f32 %v918_v2, %v82_v23  ;;  %v84_v27 = vld [vmem:[#allocation4 + $0x60] sm:$0xff]  ;;  %v130_v28 = vmul.f32 %v918_v2, %v85_v26  ;;  %v87_v30 = vld [vmem:[#allocation4 + $0x78] sm:$0xff] }
  0x1a   :  { %48 = vst.msk [vmem:[#allocation2 + $0x70] sm:$0xff] %vm33_vm0, %v844_v0  ;;  %49 = vst.msk [vmem:[#allocation2 + $0x78] sm:$0xff] %vm33_vm0, %v844_v0  ;;  %199 = vadd.xlane.f32.xlu1 %v120_v8  ;;  %195 = vadd.xlane.f32.xlu0 %v118_v9  ;;  %v129_v29 = vmul.f32 %v918_v2, %v84_v27  ;;  %v86_v31 = vld [vmem:[#allocation4 + $0x70] sm:$0xff]  ;;  %v132_v32 = vmul.f32 %v918_v2, %v87_v30  ;;  %v89_v34 = vld [vmem:[#allocation4 + $0x88] sm:$0xff] }
  0x1b   :  { %50 = vst.msk [vmem:[#allocation2 + $0x80] sm:$0xff] %vm33_vm0, %v844_v0  ;;  %51 = vst.msk [vmem:[#allocation2 + $0x88] sm:$0xff] %vm33_vm0, %v844_v0  ;;  %v131_v33 = vmul.f32 %v918_v2, %v86_v31  ;;  %v88_v35 = vld [vmem:[#allocation4 + $0x80] sm:$0xff]  ;;  %v134_v36 = vmul.f32 %v918_v2, %v89_v34  ;;  %v91_v38 = vld [vmem:[#allocation4 + $0x98] sm:$0xff] }
  0x1c   :  { %52 = vst.msk [vmem:[#allocation2 + $0x90] sm:$0xff] %vm33_vm0, %v844_v0  ;;  %53 = vst.msk [vmem:[#allocation2 + $0x98] sm:$0xff] %vm33_vm0, %v844_v0  ;;  %v133_v37 = vmul.f32 %v918_v2, %v88_v35  ;;  %v90_v39 = vld [vmem:[#allocation4 + $0x90] sm:$0xff]  ;;  %v136_v40 = vmul.f32 %v918_v2, %v91_v38  ;;  %v93_v42 = vld [vmem:[#allocation4 + $0xa8] sm:$0xff] }
  0x1d   :  { %54 = vst.msk [vmem:[#allocation2 + $0xa0] sm:$0xff] %vm33_vm0, %v844_v0  ;;  %55 = vst.msk [vmem:[#allocation2 + $0xa8] sm:$0xff] %vm33_vm0, %v844_v0  ;;  %v135_v41 = vmul.f32 %v918_v2, %v90_v39  ;;  %v92_v43 = vld [vmem:[#allocation4 + $0xa0] sm:$0xff]  ;;  %v138_v44 = vmul.f32 %v918_v2, %v93_v42  ;;  %v95_v46 = vld [vmem:[#allocation4 + $0xb8] sm:$0xff] }
  0x1e   :  { %56 = vst.msk [vmem:[#allocation2 + $0xb0] sm:$0xff] %vm33_vm0, %v844_v0  ;;  %57 = vst.msk [vmem:[#allocation2 + $0xb8] sm:$0xff] %vm33_vm0, %v844_v0  ;;  %203 = vadd.xlane.f32.xlu1 %v122_v12  ;;  %201 = vadd.xlane.f32.xlu0 %v121_v13  ;;  %v137_v45 = vmul.f32 %v918_v2, %v92_v43  ;;  %v94_v47 = vld [vmem:[#allocation4 + $0xb0] sm:$0xff]  ;;  %v140_v48 = vmul.f32 %v918_v2, %v95_v46  ;;  %v97_v50 = vld [vmem:[#allocation4 + $0xc8] sm:$0xff] }
  0x1f   :  { %58 = vst.msk [vmem:[#allocation2 + $0xc0] sm:$0xff] %vm33_vm0, %v844_v0  ;;  %59 = vst.msk [vmem:[#allocation2 + $0xc8] sm:$0xff] %vm33_vm0, %v844_v0  ;;  %v139_v49 = vmul.f32 %v918_v2, %v94_v47  ;;  %v96_v51 = vld [vmem:[#allocation4 + $0xc0] sm:$0xff]  ;;  %v142_v52 = vmul.f32 %v918_v2, %v97_v50  ;;  %v99_v54 = vld [vmem:[#allocation4 + $0xd8] sm:$0xff] }
  0x20   :  { %60 = vst.msk [vmem:[#allocation2 + $0xd0] sm:$0xff] %vm33_vm0, %v844_v0  ;;  %61 = vst.msk [vmem:[#allocation2 + $0xd8] sm:$0xff] %vm33_vm0, %v844_v0  ;;  %v141_v53 = vmul.f32 %v918_v2, %v96_v51  ;;  %v98_v55 = vld [vmem:[#allocation4 + $0xd0] sm:$0xff]  ;;  %v144_v56 = vmul.f32 %v918_v2, %v99_v54  ;;  %v101_v58 = vld [vmem:[#allocation4 + $0xe8] sm:$0xff] }
  0x21   :  { %62 = vst.msk [vmem:[#allocation2 + $0xe0] sm:$0xff] %vm33_vm0, %v844_v0  ;;  %63 = vst.msk [vmem:[#allocation2 + $0xe8] sm:$0xff] %vm33_vm0, %v844_v0  ;;  %v143_v57 = vmul.f32 %v918_v2, %v98_v55  ;;  %v100_v59 = vld [vmem:[#allocation4 + $0xe0] sm:$0xff]  ;;  %v146_v60 = vmul.f32 %v918_v2, %v101_v58  ;;  %v103_v62 = vld [vmem:[#allocation4 + $0xf8] sm:$0xff] }
  0x22   :  { %64 = vst.msk [vmem:[#allocation2 + $0xf0] sm:$0xff] %vm33_vm0, %v844_v0  ;;  %65 = vst.msk [vmem:[#allocation2 + $0xf8] sm:$0xff] %vm33_vm0, %v844_v0  ;;  %207 = vadd.xlane.f32.xlu1 %v124_v16  ;;  %205 = vadd.xlane.f32.xlu0 %v123_v17  ;;  %v145_v61 = vmul.f32 %v918_v2, %v100_v59  ;;  %v102_v63 = vld [vmem:[#allocation4 + $0xf0] sm:$0xff]  ;;  %v105_v3 = vld [vmem:[#allocation4 + $0x108] sm:$0xff] }
  0x23   :  { %66 = vst.msk [vmem:[#allocation2 + $0x100] sm:$0xff] %vm33_vm0, %v844_v0  ;;  %67 = vst.msk [vmem:[#allocation2 + $0x108] sm:$0xff] %vm33_vm0, %v844_v0  ;;  %v147_v1 = vmul.f32 %v918_v2, %v102_v63  ;;  %v104_v4 = vld [vmem:[#allocation4 + $0x100] sm:$0xff]  ;;  %v150_v5 = vmul.f32 %v918_v2, %v105_v3  ;;  %v107_v7 = vld [vmem:[#allocation4 + $0x118] sm:$0xff] }
  0x24   :  { %68 = vst.msk [vmem:[#allocation2 + $0x110] sm:$0xff] %vm33_vm0, %v844_v0  ;;  %69 = vst.msk [vmem:[#allocation2 + $0x118] sm:$0xff] %vm33_vm0, %v844_v0  ;;  %v149_v6 = vmul.f32 %v918_v2, %v104_v4  ;;  %v106_v8 = vld [vmem:[#allocation4 + $0x110] sm:$0xff]  ;;  %v152_v9 = vmul.f32 %v918_v2, %v107_v7  ;;  %v109_v11 = vld [vmem:[#allocation4 + $0x128] sm:$0xff] }
  0x25   :  { %70 = vst.msk [vmem:[#allocation2 + $0x120] sm:$0xff] %vm33_vm0, %v844_v0  ;;  %71 = vst.msk [vmem:[#allocation2 + $0x128] sm:$0xff] %vm33_vm0, %v844_v0  ;;  %v148_v0 = vmul.f32 %v918_v2, %v103_v62  ;;  %v151_v10 = vmul.f32 %v918_v2, %v106_v8  ;;  %v108_v12 = vld [vmem:[#allocation4 + $0x120] sm:$0xff]  ;;  %v154_v13 = vmul.f32 %v918_v2, %v109_v11  ;;  %v155_v16 = vld [vmem:[#allocation2] sm:$0xff] }
  0x26   :  { %211 = vadd.xlane.f32.xlu1 %v126_v20  ;;  %209 = vadd.xlane.f32.xlu0 %v125_v21  ;;  %v153_v14 = vmul.f32 %v918_v2, %v108_v12  ;;  %v157_v15 = vld [vmem:[#allocation2 + $0x10] sm:$0xff]  ;;  %v158_v21 = vld [vmem:[#allocation2 + $0x18] sm:$0xff]  ;;  %v156_v22 = vld [vmem:[#allocation2 + $0x8] sm:$0xff] }
  0x27   :  { %v160_v27 = vld [vmem:[#allocation2 + $0x28] sm:$0xff]  ;;  %v159_v2 = vld [vmem:[#allocation2 + $0x20] sm:$0xff]  ;;  %v165_v3 = vld [vmem:[#allocation2 + $0x50] sm:$0xff] }
  0x28   :  { %v164_v47 = vld [vmem:[#allocation2 + $0x48] sm:$0xff] }
  0x29   :  { %v168_v12 = vld [vmem:[#allocation2 + $0x68] sm:$0xff] }
  0x2a   :  { %215 = vadd.xlane.f32.xlu1 %v128_v24  ;;  %213 = vadd.xlane.f32.xlu0 %v127_v25 }
  0x2e   :  { %219 = vadd.xlane.f32.xlu1 %v130_v28  ;;  %217 = vadd.xlane.f32.xlu0 %v129_v29  ;;  %v965_v28 = vstv %s1193_s2 }
  0x32   :  { %223 = vadd.xlane.f32.xlu1 %v132_v32  ;;  %221 = vadd.xlane.f32.xlu0 %v131_v33  ;;  %v162_v33 = vld [vmem:[#allocation2 + $0x38] sm:$0xff] }
  0x36   :  { %227 = vadd.xlane.f32.xlu1 %v134_v36  ;;  %225 = vadd.xlane.f32.xlu0 %v133_v37  ;;  %v161_v36 = vld [vmem:[#allocation2 + $0x30] sm:$0xff] }
  0x3a   :  { %231 = vadd.xlane.f32.xlu1 %v136_v40  ;;  %229 = vadd.xlane.f32.xlu0 %v135_v41 }
  0x3e   :  { %235 = vadd.xlane.f32.xlu1 %v138_v44  ;;  %233 = vadd.xlane.f32.xlu0 %v137_v45 }
  0x42   :  { %239 = vadd.xlane.f32.xlu1 %v140_v48  ;;  %237 = vadd.xlane.f32.xlu0 %v139_v49 }
  0x46   :  { %243 = vadd.xlane.f32.xlu1 %v142_v52  ;;  %241 = vadd.xlane.f32.xlu0 %v141_v53  ;;  %v163_v52 = vld [vmem:[#allocation2 + $0x40] sm:$0xff] }
  0x4a   :  { %247 = vadd.xlane.f32.xlu1 %v144_v56  ;;  %245 = vadd.xlane.f32.xlu0 %v143_v57 }
  0x4e   :  { %251 = vadd.xlane.f32.xlu1 %v146_v60  ;;  %249 = vadd.xlane.f32.xlu0 %v145_v61  ;;  %v166_v61 = vld [vmem:[#allocation2 + $0x58] sm:$0xff] }
  0x52   :  { %255 = vadd.xlane.f32.xlu1 %v148_v0  ;;  %253 = vadd.xlane.f32.xlu0 %v147_v1 }
  0x56   :  { %259 = vadd.xlane.f32.xlu1 %v150_v5  ;;  %257 = vadd.xlane.f32.xlu0 %v149_v6 }
  0x5a   :  { %263 = vadd.xlane.f32.xlu1 %v152_v9  ;;  %261 = vadd.xlane.f32.xlu0 %v151_v10 }
  0x5e   :  { %267 = vadd.xlane.f32.xlu1 %v154_v13  ;;  %265 = vadd.xlane.f32.xlu0 %v153_v14 }
  0xa3   :  { %v198_v17 = vpop.xlane.xlu1 %197  ;;  %v194_v18 = vpop.xlane.xlu0 %193 }
  0xa4   :  { %v271_v19 = vadd.f32 %v198_v17, %v157_v15  ;;  %v269_v20 = vadd.f32 %v194_v18, %v155_v16  ;;  %v167_v17 = vld [vmem:[#allocation2 + $0x60] sm:$0xff] }
  0xa6   :  { %310 = vst.msk [vmem:[#allocation2 + $0x10] sm:$0xff] %vm33_vm0, %v271_v19  ;;  %308 = vst.msk [vmem:[#allocation2] sm:$0xff] %vm33_vm0, %v269_v20 }
  0xa7   :  { %v200_v23 = vpop.xlane.xlu1 %199  ;;  %v196_v24 = vpop.xlane.xlu0 %195 }
  0xa8   :  { %v272_v25 = vadd.f32 %v200_v23, %v158_v21  ;;  %v270_v26 = vadd.f32 %v196_v24, %v156_v22 }
  0xaa   :  { %311 = vst.msk [vmem:[#allocation2 + $0x18] sm:$0xff] %vm33_vm0, %v272_v25  ;;  %309 = vst.msk [vmem:[#allocation2 + $0x8] sm:$0xff] %vm33_vm0, %v270_v26  ;;  %v170_v25 = vld [vmem:[#allocation2 + $0x78] sm:$0xff] }
  0xab   :  { %v204_v29 = vpop.xlane.xlu1 %203  ;;  %v202_v30 = vpop.xlane.xlu0 %201 }
  0xac   :  { %v274_v31 = vadd.f32 %v204_v29, %v160_v27  ;;  %v273_v32 = vadd.f32 %v202_v30, %v159_v2  ;;  %v169_v30 = vld [vmem:[#allocation2 + $0x70] sm:$0xff] }
  0xad   :  { %v351_v34 = vld [vmem:[#allocation2 + $0x10] sm:$0xff]  ;;  %v349_v35 = vld [vmem:[#allocation2] sm:$0xff] }
  0xae   :  { %v391_v37 = vadd.f32 %v965_v28, %v351_v34  ;;  %v389_v38 = vadd.f32 %v965_v28, %v349_v35  ;;  %313 = vst.msk [vmem:[#allocation2 + $0x28] sm:$0xff] %vm33_vm0, %v274_v31  ;;  %312 = vst.msk [vmem:[#allocation2 + $0x20] sm:$0xff] %vm33_vm0, %v273_v32 }
  0xaf   :  { %v208_v39 = vpop.xlane.xlu1 %207  ;;  %v206_v40 = vpop.xlane.xlu0 %205 }
  0xb0   :  { %v429_v41 = vsub.f32 0.0, %v391_v37  ;;  %v427_v42 = vsub.f32 0.0, %v389_v38  ;;  %v276_v43 = vadd.f32 %v208_v39, %v162_v33  ;;  %v275_v44 = vadd.f32 %v206_v40, %v161_v36 }
  0xb1   :  { %v352_v45 = vld [vmem:[#allocation2 + $0x18] sm:$0xff]  ;;  %v350_v46 = vld [vmem:[#allocation2 + $0x8] sm:$0xff] }
  0xb2   :  { %v469_v48 = vmul.f32 1.442695, %v429_v41  ;;  %v465_v49 = vmul.f32 1.442695, %v427_v42  ;;  %v392_v50 = vadd.f32 %v965_v28, %v352_v45  ;;  %v390_v51 = vadd.f32 %v965_v28, %v350_v46  ;;  %315 = vst.msk [vmem:[#allocation2 + $0x38] sm:$0xff] %vm33_vm0, %v276_v43  ;;  %314 = vst.msk [vmem:[#allocation2 + $0x30] sm:$0xff] %vm33_vm0, %v275_v44 }
  0xb3   :  { %v212_v53 = vpop.xlane.xlu1 %211  ;;  %v210_v54 = vpop.xlane.xlu0 %209  ;;  %v172_v43 = vld [vmem:[#allocation2 + $0x88] sm:$0xff] }
  0xb4   :  { %665 = vpow2.f32 %v469_v48  ;;  %v430_v55 = vsub.f32 0.0, %v392_v50  ;;  %v428_v56 = vsub.f32 0.0, %v390_v51  ;;  %v278_v57 = vadd.f32 %v212_v53, %v164_v47  ;;  %v171_v48 = vld [vmem:[#allocation2 + $0x80] sm:$0xff] }
  0xb5   :  { %667 = vpow2.f32 %v465_v49  ;;  %v354_v58 = vld [vmem:[#allocation2 + $0x28] sm:$0xff]  ;;  %v353_v59 = vld [vmem:[#allocation2 + $0x20] sm:$0xff]  ;;  %v277_v60 = vadd.f32 %v210_v54, %v163_v52 }
  0xb6   :  { %v471_v62 = vmul.f32 1.442695, %v430_v55  ;;  %v467_v63 = vmul.f32 1.442695, %v428_v56  ;;  %v394_v0 = vadd.f32 %v965_v28, %v354_v58  ;;  %v393_v1 = vadd.f32 %v965_v28, %v353_v59  ;;  %317 = vst.msk [vmem:[#allocation2 + $0x48] sm:$0xff] %vm33_vm0, %v278_v57 }
  0xb7   :  { %316 = vst.msk [vmem:[#allocation2 + $0x40] sm:$0xff] %vm33_vm0, %v277_v60  ;;  %v216_v4 = vpop.xlane.xlu1 %215  ;;  %v214_v5 = vpop.xlane.xlu0 %213 }
  0xb8   :  { %669 = vpow2.f32 %v471_v62  ;;  %v432_v6 = vsub.f32 0.0, %v394_v0  ;;  %v431_v7 = vsub.f32 0.0, %v393_v1  ;;  %v280_v8 = vadd.f32 %v216_v4, %v166_v61  ;;  %v174_v61 = vld [vmem:[#allocation2 + $0x98] sm:$0xff] }
  0xb9   :  { %671 = vpow2.f32 %v467_v63  ;;  %v356_v9 = vld [vmem:[#allocation2 + $0x38] sm:$0xff]  ;;  %v355_v10 = vld [vmem:[#allocation2 + $0x30] sm:$0xff]  ;;  %v279_v11 = vadd.f32 %v214_v5, %v165_v3 }
  0xba   :  { %v475_v13 = vmul.f32 1.442695, %v432_v6  ;;  %v473_v14 = vmul.f32 1.442695, %v431_v7  ;;  %v396_v15 = vadd.f32 %v965_v28, %v356_v9  ;;  %v395_v16 = vadd.f32 %v965_v28, %v355_v10  ;;  %319 = vst.msk [vmem:[#allocation2 + $0x58] sm:$0xff] %vm33_vm0, %v280_v8  ;;  %v173_v3 = vld [vmem:[#allocation2 + $0x90] sm:$0xff] }
  0xbb   :  { %318 = vst.msk [vmem:[#allocation2 + $0x50] sm:$0xff] %vm33_vm0, %v279_v11  ;;  %v220_v18 = vpop.xlane.xlu1 %219  ;;  %v218_v19 = vpop.xlane.xlu0 %217 }
  0xbc   :  { %673 = vpow2.f32 %v475_v13  ;;  %v434_v20 = vsub.f32 0.0, %v396_v15  ;;  %v433_v21 = vsub.f32 0.0, %v395_v16  ;;  %v282_v22 = vadd.f32 %v220_v18, %v168_v12  ;;  %v176_v16 = vld [vmem:[#allocation2 + $0xa8] sm:$0xff] }
  0xbd   :  { %675 = vpow2.f32 %v473_v14  ;;  %v358_v23 = vld [vmem:[#allocation2 + $0x48] sm:$0xff]  ;;  %v281_v24 = vadd.f32 %v218_v19, %v167_v17  ;;  %v175_v17 = vld [vmem:[#allocation2 + $0xa0] sm:$0xff] }
  0xbe   :  { %v666_v26 = vpop.eup %665  ;;  %v479_v27 = vmul.f32 1.442695, %v434_v20  ;;  %v398_v2 = vadd.f32 %v965_v28, %v358_v23  ;;  %v357_v29 = vld [vmem:[#allocation2 + $0x40] sm:$0xff]  ;;  %321 = vst.msk [vmem:[#allocation2 + $0x68] sm:$0xff] %vm33_vm0, %v282_v22  ;;  %v477_v33 = vmul.f32 1.442695, %v433_v21 }
  0xbf   :  { %v668_v31 = vpop.eup %667  ;;  %v543_v32 = vadd.f32 1.0, %v666_v26  ;;  %v397_v34 = vadd.f32 %v965_v28, %v357_v29  ;;  %320 = vst.msk [vmem:[#allocation2 + $0x60] sm:$0xff] %vm33_vm0, %v281_v24  ;;  %v224_v35 = vpop.xlane.xlu1 %223 }
  0xc0   :  { %v222_v36 = vpop.xlane.xlu0 %221  ;;  %v541_v37 = vadd.f32 1.0, %v668_v31  ;;  %677 = vpow2.f32 %v479_v27  ;;  %v436_v38 = vsub.f32 0.0, %v398_v2  ;;  %v284_v39 = vadd.f32 %v224_v35, %v170_v25  ;;  %v178_v35 = vld [vmem:[#allocation2 + $0xb8] sm:$0xff] }
  0xc1   :  { %679 = vrcp.f32 %v543_v32  ;;  %v435_v40 = vsub.f32 0.0, %v397_v34  ;;  %v360_v41 = vld [vmem:[#allocation2 + $0x58] sm:$0xff]  ;;  %v283_v42 = vadd.f32 %v222_v36, %v169_v30  ;;  %v177_v36 = vld [vmem:[#allocation2 + $0xb0] sm:$0xff] }
  0xc2   :  { %v670_v44 = vpop.eup %669  ;;  %681 = vrcp.f32 %v541_v37  ;;  %v483_v45 = vmul.f32 1.442695, %v436_v38  ;;  %v400_v46 = vadd.f32 %v965_v28, %v360_v41  ;;  %v359_v47 = vld [vmem:[#allocation2 + $0x50] sm:$0xff]  ;;  %323 = vst.msk [vmem:[#allocation2 + $0x78] sm:$0xff] %vm33_vm0, %v284_v39 }
  0xc3   :  { %v672_v49 = vpop.eup %671  ;;  %v544_v50 = vadd.f32 1.0, %v670_v44  ;;  %683 = vpow2.f32 %v477_v33  ;;  %v481_v51 = vmul.f32 1.442695, %v435_v40  ;;  %v399_v52 = vadd.f32 %v965_v28, %v359_v47  ;;  %322 = vst.msk [vmem:[#allocation2 + $0x70] sm:$0xff] %vm33_vm0, %v283_v42  ;;  %v228_v53 = vpop.xlane.xlu1 %227 }
  0xc4   :  { %v226_v54 = vpop.xlane.xlu0 %225  ;;  %v542_v55 = vadd.f32 1.0, %v672_v49  ;;  %685 = vpow2.f32 %v483_v45  ;;  %v438_v56 = vsub.f32 0.0, %v400_v46  ;;  %v286_v57 = vadd.f32 %v228_v53, %v172_v43 }
  0xc5   :  { %687 = vrcp.f32 %v544_v50  ;;  %v437_v58 = vsub.f32 0.0, %v399_v52  ;;  %v362_v59 = vld [vmem:[#allocation2 + $0x68] sm:$0xff]  ;;  %v285_v60 = vadd.f32 %v226_v54, %v171_v48 }
  0xc6   :  { %v674_v62 = vpop.eup %673  ;;  %689 = vrcp.f32 %v542_v55  ;;  %v487_v63 = vmul.f32 1.442695, %v438_v56  ;;  %v402_v0 = vadd.f32 %v965_v28, %v362_v59  ;;  %v361_v1 = vld [vmem:[#allocation2 + $0x60] sm:$0xff]  ;;  %325 = vst.msk [vmem:[#allocation2 + $0x88] sm:$0xff] %vm33_vm0, %v286_v57  ;;  %v180_v55 = vld [vmem:[#allocation2 + $0xc8] sm:$0xff] }
  0xc7   :  { %v676_v4 = vpop.eup %675  ;;  %v546_v5 = vadd.f32 1.0, %v674_v62  ;;  %691 = vpow2.f32 %v481_v51  ;;  %v485_v6 = vmul.f32 1.442695, %v437_v58  ;;  %v401_v7 = vadd.f32 %v965_v28, %v361_v1  ;;  %324 = vst.msk [vmem:[#allocation2 + $0x80] sm:$0xff] %vm33_vm0, %v285_v60  ;;  %v232_v8 = vpop.xlane.xlu1 %231  ;;  %v179_v56 = vld [vmem:[#allocation2 + $0xc0] sm:$0xff] }
  0xc8   :  { %v230_v9 = vpop.xlane.xlu0 %229  ;;  %v545_v10 = vadd.f32 1.0, %v676_v4  ;;  %693 = vpow2.f32 %v487_v63  ;;  %v440_v11 = vsub.f32 0.0, %v402_v0  ;;  %v288_v12 = vadd.f32 %v232_v8, %v174_v61 }
  0xc9   :  { %695 = vrcp.f32 %v546_v5  ;;  %v439_v13 = vsub.f32 0.0, %v401_v7  ;;  %v364_v14 = vld [vmem:[#allocation2 + $0x78] sm:$0xff]  ;;  %v287_v15 = vadd.f32 %v230_v9, %v173_v3 }
  0xca   :  { %v678_v18 = vpop.eup %677  ;;  %697 = vrcp.f32 %v545_v10  ;;  %v491_v19 = vmul.f32 1.442695, %v440_v11  ;;  %v404_v20 = vadd.f32 %v965_v28, %v364_v14  ;;  %v363_v21 = vld [vmem:[#allocation2 + $0x70] sm:$0xff]  ;;  %327 = vst.msk [vmem:[#allocation2 + $0x98] sm:$0xff] %vm33_vm0, %v288_v12  ;;  %v182_v9 = vld [vmem:[#allocation2 + $0xd8] sm:$0xff] }
  0xcb   :  { %v680_v22 = vpop.eup %679  ;;  %v548_v23 = vadd.f32 1.0, %v678_v18  ;;  %699 = vpow2.f32 %v485_v6  ;;  %v489_v24 = vmul.f32 1.442695, %v439_v13  ;;  %v403_v25 = vadd.f32 %v965_v28, %v363_v21  ;;  %326 = vst.msk [vmem:[#allocation2 + $0x90] sm:$0xff] %vm33_vm0, %v287_v15  ;;  %v236_v26 = vpop.xlane.xlu1 %235  ;;  %v181_v14 = vld [vmem:[#allocation2 + $0xd0] sm:$0xff] }
  0xcc   :  { %v234_v27 = vpop.xlane.xlu0 %233  ;;  %v682_v2 = vpop.eup %681  ;;  %619 = vst.msk [vmem:[%s1194_s3 + $0x10] sm:$0xff] %vm33_vm0, %v680_v22  ;;  %701 = vpow2.f32 %v491_v19  ;;  %v442_v29 = vsub.f32 0.0, %v404_v20  ;;  %v290_v30 = vadd.f32 %v236_v26, %v176_v16 }
  0xcd   :  { %v289_v31 = vadd.f32 %v234_v27, %v175_v17  ;;  %v684_v32 = vpop.eup %683  ;;  %617 = vst.msk [vmem:[%s1194_s3] sm:$0xff] %vm33_vm0, %v682_v2  ;;  %703 = vrcp.f32 %v548_v23  ;;  %v441_v33 = vsub.f32 0.0, %v403_v25  ;;  %v366_v34 = vld [vmem:[#allocation2 + $0x88] sm:$0xff] }
  0xce   :  { %v686_v37 = vpop.eup %685  ;;  %v547_v38 = vadd.f32 1.0, %v684_v32  ;;  %705 = vpow2.f32 %v489_v24  ;;  %v495_v39 = vmul.f32 1.442695, %v442_v29  ;;  %v406_v40 = vadd.f32 %v965_v28, %v366_v34  ;;  %v365_v41 = vld [vmem:[#allocation2 + $0x80] sm:$0xff]  ;;  %329 = vst.msk [vmem:[#allocation2 + $0xa8] sm:$0xff] %vm33_vm0, %v290_v30 }
  0xcf   :  { %328 = vst.msk [vmem:[#allocation2 + $0xa0] sm:$0xff] %vm33_vm0, %v289_v31  ;;  %v688_v42 = vpop.eup %687  ;;  %v550_v43 = vadd.f32 1.0, %v686_v37  ;;  %v493_v44 = vmul.f32 1.442695, %v441_v33  ;;  %v405_v45 = vadd.f32 %v965_v28, %v365_v41  ;;  %v240_v46 = vpop.xlane.xlu1 %239  ;;  %v184_v33 = vld [vmem:[#allocation2 + $0xe8] sm:$0xff] }
  0xd0   :  { %v238_v47 = vpop.xlane.xlu0 %237  ;;  %v690_v48 = vpop.eup %689  ;;  %620 = vst.msk [vmem:[%s1194_s3 + $0x18] sm:$0xff] %vm33_vm0, %v688_v42  ;;  %707 = vrcp.f32 %v547_v38  ;;  %v444_v49 = vsub.f32 0.0, %v406_v40  ;;  %v292_v50 = vadd.f32 %v240_v46, %v178_v35  ;;  %v183_v38 = vld [vmem:[#allocation2 + $0xe0] sm:$0xff] }
  0xd1   :  { %v291_v51 = vadd.f32 %v238_v47, %v177_v36  ;;  %v692_v52 = vpop.eup %691  ;;  %618 = vst.msk [vmem:[%s1194_s3 + $0x8] sm:$0xff] %vm33_vm0, %v690_v48  ;;  %709 = vrcp.f32 %v550_v43  ;;  %v443_v53 = vsub.f32 0.0, %v405_v45  ;;  %v368_v54 = vld [vmem:[#allocation2 + $0x98] sm:$0xff] }
  0xd2   :  { %v694_v57 = vpop.eup %693  ;;  %v549_v58 = vadd.f32 1.0, %v692_v52  ;;  %711 = vpow2.f32 %v495_v39  ;;  %v499_v59 = vmul.f32 1.442695, %v444_v49  ;;  %v408_v60 = vadd.f32 %v965_v28, %v368_v54  ;;  %v367_v61 = vld [vmem:[#allocation2 + $0x90] sm:$0xff]  ;;  %331 = vst.msk [vmem:[#allocation2 + $0xb8] sm:$0xff] %vm33_vm0, %v292_v50  ;;  %v186_v47 = vld [vmem:[#allocation2 + $0xf8] sm:$0xff] }
  0xd3   :  { %330 = vst.msk [vmem:[#allocation2 + $0xb0] sm:$0xff] %vm33_vm0, %v291_v51  ;;  %v696_v62 = vpop.eup %695  ;;  %v552_v63 = vadd.f32 1.0, %v694_v57  ;;  %713 = vpow2.f32 %v493_v44  ;;  %v497_v0 = vmul.f32 1.442695, %v443_v53  ;;  %v407_v1 = vadd.f32 %v965_v28, %v367_v61  ;;  %v244_v3 = vpop.xlane.xlu1 %243  ;;  %v185_v53 = vld [vmem:[#allocation2 + $0xf0] sm:$0xff] }
  0xd4   :  { %v242_v4 = vpop.xlane.xlu0 %241  ;;  %v698_v5 = vpop.eup %697  ;;  %622 = vst.msk [vmem:[%s1194_s3 + $0x28] sm:$0xff] %vm33_vm0, %v696_v62  ;;  %715 = vrcp.f32 %v549_v58  ;;  %v446_v6 = vsub.f32 0.0, %v408_v60  ;;  %v294_v7 = vadd.f32 %v244_v3, %v180_v55 }
  0xd5   :  { %v293_v8 = vadd.f32 %v242_v4, %v179_v56  ;;  %v700_v10 = vpop.eup %699  ;;  %621 = vst.msk [vmem:[%s1194_s3 + $0x20] sm:$0xff] %vm33_vm0, %v698_v5  ;;  %717 = vrcp.f32 %v552_v63  ;;  %v445_v11 = vsub.f32 0.0, %v407_v1  ;;  %v370_v12 = vld [vmem:[#allocation2 + $0xa8] sm:$0xff] }
  0xd6   :  { %v369_v13 = vld [vmem:[#allocation2 + $0xa0] sm:$0xff]  ;;  %v702_v15 = vpop.eup %701  ;;  %v551_v16 = vadd.f32 1.0, %v700_v10  ;;  %719 = vpow2.f32 %v499_v59  ;;  %v503_v17 = vmul.f32 1.442695, %v446_v6  ;;  %v410_v18 = vadd.f32 %v965_v28, %v370_v12  ;;  %333 = vst.msk [vmem:[#allocation2 + $0xc8] sm:$0xff] %vm33_vm0, %v294_v7 }
  0xd7   :  { %332 = vst.msk [vmem:[#allocation2 + $0xc0] sm:$0xff] %vm33_vm0, %v293_v8  ;;  %v704_v19 = vpop.eup %703  ;;  %v554_v20 = vadd.f32 1.0, %v702_v15  ;;  %721 = vpow2.f32 %v497_v0  ;;  %v501_v21 = vmul.f32 1.442695, %v445_v11  ;;  %v409_v22 = vadd.f32 %v965_v28, %v369_v13  ;;  %v248_v23 = vpop.xlane.xlu1 %247 }
  0xd8   :  { %v246_v24 = vpop.xlane.xlu0 %245  ;;  %v706_v25 = vpop.eup %705  ;;  %624 = vst.msk [vmem:[%s1194_s3 + $0x38] sm:$0xff] %vm33_vm0, %v704_v19  ;;  %723 = vrcp.f32 %v551_v16  ;;  %v448_v26 = vsub.f32 0.0, %v410_v18  ;;  %v296_v27 = vadd.f32 %v248_v23, %v182_v9  ;;  %v188_v9 = vld [vmem:[#allocation2 + $0x108] sm:$0xff] }
  0xd9   :  { %v295_v2 = vadd.f32 %v246_v24, %v181_v14  ;;  %725 = vrcp.f32 %v554_v20  ;;  %v553_v29 = vadd.f32 1.0, %v706_v25  ;;  %v447_v30 = vsub.f32 0.0, %v409_v22  ;;  %v372_v31 = vld [vmem:[#allocation2 + $0xb8] sm:$0xff]  ;;  %v187_v14 = vld [vmem:[#allocation2 + $0x100] sm:$0xff] }
  0xda   :  { %v371_v32 = vld [vmem:[#allocation2 + $0xb0] sm:$0xff]  ;;  %v708_v34 = vpop.eup %707  ;;  %727 = vpow2.f32 %v503_v17  ;;  %v507_v35 = vmul.f32 1.442695, %v448_v26  ;;  %v412_v36 = vadd.f32 %v965_v28, %v372_v31  ;;  %335 = vst.msk [vmem:[#allocation2 + $0xd8] sm:$0xff] %vm33_vm0, %v296_v27 }
  0xdb   :  { %v411_v37 = vadd.f32 %v965_v28, %v371_v32  ;;  %334 = vst.msk [vmem:[#allocation2 + $0xd0] sm:$0xff] %vm33_vm0, %v295_v2  ;;  %v710_v39 = vpop.eup %709  ;;  %623 = vst.msk [vmem:[%s1194_s3 + $0x30] sm:$0xff] %vm33_vm0, %v708_v34  ;;  %729 = vrcp.f32 %v553_v29  ;;  %v505_v40 = vmul.f32 1.442695, %v447_v30  ;;  %v252_v41 = vpop.xlane.xlu1 %251  ;;  %v190_v2 = vld [vmem:[#allocation2 + $0x118] sm:$0xff] }
  0xdc   :  { %v250_v42 = vpop.xlane.xlu0 %249  ;;  %v712_v43 = vpop.eup %711  ;;  %626 = vst.msk [vmem:[%s1194_s3 + $0x48] sm:$0xff] %vm33_vm0, %v710_v39  ;;  %731 = vpow2.f32 %v501_v21  ;;  %v450_v44 = vsub.f32 0.0, %v412_v36  ;;  %v298_v46 = vadd.f32 %v252_v41, %v184_v33  ;;  %v189_v33 = vld [vmem:[#allocation2 + $0x110] sm:$0xff] }
  0xdd   :  { %v449_v45 = vsub.f32 0.0, %v411_v37  ;;  %v714_v48 = vpop.eup %713  ;;  %v556_v49 = vadd.f32 1.0, %v712_v43  ;;  %733 = vpow2.f32 %v507_v35  ;;  %v374_v50 = vld [vmem:[#allocation2 + $0xc8] sm:$0xff]  ;;  %v297_v52 = vadd.f32 %v250_v42, %v183_v38 }
  0xde   :  { %v373_v51 = vld [vmem:[#allocation2 + $0xc0] sm:$0xff]  ;;  %v716_v54 = vpop.eup %715  ;;  %v555_v55 = vadd.f32 1.0, %v714_v48  ;;  %735 = vpow2.f32 %v505_v40  ;;  %v511_v56 = vmul.f32 1.442695, %v450_v44  ;;  %337 = vst.msk [vmem:[#allocation2 + $0xe8] sm:$0xff] %vm33_vm0, %v298_v46  ;;  %v414_v59 = vadd.f32 %v965_v28, %v374_v50 }
  0xdf   :  { %v509_v57 = vmul.f32 1.442695, %v449_v45  ;;  %v718_v58 = vpop.eup %717  ;;  %625 = vst.msk [vmem:[%s1194_s3 + $0x40] sm:$0xff] %vm33_vm0, %v716_v54  ;;  %737 = vrcp.f32 %v556_v49  ;;  %v413_v60 = vadd.f32 %v965_v28, %v373_v51  ;;  %336 = vst.msk [vmem:[#allocation2 + $0xe0] sm:$0xff] %vm33_vm0, %v297_v52  ;;  %v256_v61 = vpop.xlane.xlu1 %255  ;;  %v192_v54 = vld [vmem:[#allocation2 + $0x128] sm:$0xff] }
  0xe0   :  { %v254_v62 = vpop.xlane.xlu0 %253  ;;  %v720_v63 = vpop.eup %719  ;;  %628 = vst.msk [vmem:[%s1194_s3 + $0x58] sm:$0xff] %vm33_vm0, %v718_v58  ;;  %739 = vrcp.f32 %v555_v55  ;;  %v300_v0 = vadd.f32 %v256_v61, %v186_v47  ;;  %v452_v5 = vsub.f32 0.0, %v414_v59  ;;  %v191_v55 = vld [vmem:[#allocation2 + $0x120] sm:$0xff] }
  0xe1   :  { %v299_v1 = vadd.f32 %v254_v62, %v185_v53  ;;  %v722_v3 = vpop.eup %721  ;;  %v558_v4 = vadd.f32 1.0, %v720_v63  ;;  %741 = vpow2.f32 %v511_v56  ;;  %v451_v6 = vsub.f32 0.0, %v413_v60  ;;  %v376_v7 = vld [vmem:[#allocation2 + $0xd8] sm:$0xff] }
  0xe2   :  { %v375_v8 = vld [vmem:[#allocation2 + $0xd0] sm:$0xff]  ;;  %v724_v10 = vpop.eup %723  ;;  %v557_v11 = vadd.f32 1.0, %v722_v3  ;;  %743 = vpow2.f32 %v509_v57  ;;  %v416_v12 = vadd.f32 %v965_v28, %v376_v7  ;;  %339 = vst.msk [vmem:[#allocation2 + $0xf8] sm:$0xff] %vm33_vm0, %v300_v0  ;;  %v515_v16 = vmul.f32 1.442695, %v452_v5 }
  0xe3   :  { %v415_v13 = vadd.f32 %v965_v28, %v375_v8  ;;  %338 = vst.msk [vmem:[#allocation2 + $0xf0] sm:$0xff] %vm33_vm0, %v299_v1  ;;  %v726_v15 = vpop.eup %725  ;;  %627 = vst.msk [vmem:[%s1194_s3 + $0x50] sm:$0xff] %vm33_vm0, %v724_v10  ;;  %745 = vrcp.f32 %v558_v4  ;;  %v513_v17 = vmul.f32 1.442695, %v451_v6  ;;  %v260_v18 = vpop.xlane.xlu1 %259 }
  0xe4   :  { %v258_v19 = vpop.xlane.xlu0 %257  ;;  %v728_v20 = vpop.eup %727  ;;  %630 = vst.msk [vmem:[%s1194_s3 + $0x68] sm:$0xff] %vm33_vm0, %v726_v15  ;;  %747 = vrcp.f32 %v557_v11  ;;  %v454_v21 = vsub.f32 0.0, %v416_v12  ;;  %v302_v23 = vadd.f32 %v260_v18, %v188_v9 }
  0xe5   :  { %v453_v22 = vsub.f32 0.0, %v415_v13  ;;  %v730_v24 = vpop.eup %729  ;;  %v560_v25 = vadd.f32 1.0, %v728_v20  ;;  %749 = vpow2.f32 %v515_v16  ;;  %v378_v26 = vld [vmem:[#allocation2 + $0xe8] sm:$0xff]  ;;  %v301_v27 = vadd.f32 %v258_v19, %v187_v14 }
  0xe6   :  { %v732_v29 = vpop.eup %731  ;;  %629 = vst.msk [vmem:[%s1194_s3 + $0x60] sm:$0xff] %vm33_vm0, %v730_v24  ;;  %751 = vpow2.f32 %v513_v17  ;;  %v519_v30 = vmul.f32 1.442695, %v454_v21  ;;  %v418_v31 = vadd.f32 %v965_v28, %v378_v26  ;;  %v377_v32 = vld [vmem:[#allocation2 + $0xe0] sm:$0xff]  ;;  %341 = vst.msk [vmem:[#allocation2 + $0x108] sm:$0xff] %vm33_vm0, %v302_v23 }
  0xe7   :  { %v734_v34 = vpop.eup %733  ;;  %753 = vrcp.f32 %v560_v25  ;;  %v559_v35 = vadd.f32 1.0, %v732_v29  ;;  %v517_v36 = vmul.f32 1.442695, %v453_v22  ;;  %v417_v37 = vadd.f32 %v965_v28, %v377_v32  ;;  %340 = vst.msk [vmem:[#allocation2 + $0x100] sm:$0xff] %vm33_vm0, %v301_v27  ;;  %v264_v38 = vpop.xlane.xlu1 %263 }
  0xe8   :  { %v262_v39 = vpop.xlane.xlu0 %261  ;;  %v736_v40 = vpop.eup %735  ;;  %v562_v41 = vadd.f32 1.0, %v734_v34  ;;  %755 = vpow2.f32 %v519_v30  ;;  %v456_v42 = vsub.f32 0.0, %v418_v31  ;;  %v304_v43 = vadd.f32 %v264_v38, %v190_v2 }
  0xe9   :  { %v738_v44 = vpop.eup %737  ;;  %757 = vrcp.f32 %v559_v35  ;;  %v561_v45 = vadd.f32 1.0, %v736_v40  ;;  %v455_v46 = vsub.f32 0.0, %v417_v37  ;;  %v380_v47 = vld [vmem:[#allocation2 + $0xf8] sm:$0xff]  ;;  %v303_v49 = vadd.f32 %v262_v39, %v189_v33 }
  0xea   :  { %v379_v48 = vld [vmem:[#allocation2 + $0xf0] sm:$0xff]  ;;  %v740_v50 = vpop.eup %739  ;;  %632 = vst.msk [vmem:[%s1194_s3 + $0x78] sm:$0xff] %vm33_vm0, %v738_v44  ;;  %759 = vrcp.f32 %v562_v41  ;;  %v523_v51 = vmul.f32 1.442695, %v456_v42  ;;  %v420_v52 = vadd.f32 %v965_v28, %v380_v47  ;;  %343 = vst.msk [vmem:[#allocation2 + $0x118] sm:$0xff] %vm33_vm0, %v304_v43 }
  0xeb   :  { %v419_v53 = vadd.f32 %v965_v28, %v379_v48  ;;  %v742_v56 = vpop.eup %741  ;;  %631 = vst.msk [vmem:[%s1194_s3 + $0x70] sm:$0xff] %vm33_vm0, %v740_v50  ;;  %761 = vrcp.f32 %v561_v45  ;;  %v521_v57 = vmul.f32 1.442695, %v455_v46  ;;  %342 = vst.msk [vmem:[#allocation2 + $0x110] sm:$0xff] %vm33_vm0, %v303_v49  ;;  %v268_v58 = vpop.xlane.xlu1 %267 }
  0xec   :  { %v266_v59 = vpop.xlane.xlu0 %265  ;;  %v744_v60 = vpop.eup %743  ;;  %v564_v61 = vadd.f32 1.0, %v742_v56  ;;  %763 = vpow2.f32 %v517_v36  ;;  %v458_v62 = vsub.f32 0.0, %v420_v52  ;;  %v306_v4 = vadd.f32 %v268_v58, %v192_v54 }
  0xed   :  { %v457_v63 = vsub.f32 0.0, %v419_v53  ;;  %v746_v0 = vpop.eup %745  ;;  %v563_v1 = vadd.f32 1.0, %v744_v60  ;;  %765 = vpow2.f32 %v523_v51  ;;  %v382_v3 = vld [vmem:[#allocation2 + $0x108] sm:$0xff]  ;;  %v305_v5 = vadd.f32 %v266_v59, %v191_v55 }
  0xee   :  { %v748_v6 = vpop.eup %747  ;;  %634 = vst.msk [vmem:[%s1194_s3 + $0x88] sm:$0xff] %vm33_vm0, %v746_v0  ;;  %767 = vrcp.f32 %v564_v61  ;;  %v527_v7 = vmul.f32 1.442695, %v458_v62  ;;  %v422_v8 = vadd.f32 %v965_v28, %v382_v3  ;;  %v381_v9 = vld [vmem:[#allocation2 + $0x100] sm:$0xff]  ;;  %345 = vst.msk [vmem:[#allocation2 + $0x128] sm:$0xff] %vm33_vm0, %v306_v4 }
  0xef   :  { %v750_v10 = vpop.eup %749  ;;  %633 = vst.msk [vmem:[%s1194_s3 + $0x80] sm:$0xff] %vm33_vm0, %v748_v6  ;;  %769 = vrcp.f32 %v563_v1  ;;  %v421_v11 = vadd.f32 %v965_v28, %v381_v9  ;;  %344 = vst.msk [vmem:[#allocation2 + $0x120] sm:$0xff] %vm33_vm0, %v305_v5  ;;  %v525_v14 = vmul.f32 1.442695, %v457_v63 }
  0xf0   :  { %v752_v12 = vpop.eup %751  ;;  %v566_v13 = vadd.f32 1.0, %v750_v10  ;;  %771 = vpow2.f32 %v521_v57  ;;  %v460_v15 = vsub.f32 0.0, %v422_v8 }
  0xf1   :  { %v754_v16 = vpop.eup %753  ;;  %v565_v17 = vadd.f32 1.0, %v752_v12  ;;  %773 = vpow2.f32 %v527_v7  ;;  %v459_v18 = vsub.f32 0.0, %v421_v11  ;;  %v384_v19 = vld [vmem:[#allocation2 + $0x118] sm:$0xff] }
  0xf2   :  { %v756_v20 = vpop.eup %755  ;;  %636 = vst.msk [vmem:[%s1194_s3 + $0x98] sm:$0xff] %vm33_vm0, %v754_v16  ;;  %775 = vrcp.f32 %v566_v13  ;;  %v531_v21 = vmul.f32 1.442695, %v460_v15  ;;  %v424_v22 = vadd.f32 %v965_v28, %v384_v19  ;;  %v383_v23 = vld [vmem:[#allocation2 + $0x110] sm:$0xff] }
  0xf3   :  { %v758_v24 = vpop.eup %757  ;;  %777 = vrcp.f32 %v565_v17  ;;  %v568_v25 = vadd.f32 1.0, %v756_v20  ;;  %v529_v26 = vmul.f32 1.442695, %v459_v18  ;;  %v423_v27 = vadd.f32 %v965_v28, %v383_v23 }
  0xf4   :  { %v760_v2 = vpop.eup %759  ;;  %635 = vst.msk [vmem:[%s1194_s3 + $0x90] sm:$0xff] %vm33_vm0, %v758_v24  ;;  %779 = vpow2.f32 %v525_v14  ;;  %v462_v29 = vsub.f32 0.0, %v424_v22 }
  0xf5   :  { %v762_v30 = vpop.eup %761  ;;  %638 = vst.msk [vmem:[%s1194_s3 + $0xa8] sm:$0xff] %vm33_vm0, %v760_v2  ;;  %781 = vrcp.f32 %v568_v25  ;;  %v461_v31 = vsub.f32 0.0, %v423_v27  ;;  %v386_v34 = vld [vmem:[#allocation2 + $0x128] sm:$0xff] }
  0xf6   :  { %v764_v32 = vpop.eup %763  ;;  %637 = vst.msk [vmem:[%s1194_s3 + $0xa0] sm:$0xff] %vm33_vm0, %v762_v30  ;;  %783 = vpow2.f32 %v531_v21  ;;  %v535_v33 = vmul.f32 1.442695, %v462_v29  ;;  %v385_v35 = vld [vmem:[#allocation2 + $0x120] sm:$0xff]  ;;  %v426_v39 = vadd.f32 %v965_v28, %v386_v34 }
  0xf7   :  { %v766_v36 = vpop.eup %765  ;;  %v567_v37 = vadd.f32 1.0, %v764_v32  ;;  %785 = vpow2.f32 %v529_v26  ;;  %v533_v38 = vmul.f32 1.442695, %v461_v31  ;;  %v425_v42 = vadd.f32 %v965_v28, %v385_v35 }
  0xf8   :  { %v768_v40 = vpop.eup %767  ;;  %v570_v41 = vadd.f32 1.0, %v766_v36  ;;  %787 = vpow2.f32 %v535_v33  ;;  %v464_v44 = vsub.f32 0.0, %v426_v39 }
  0xf9   :  { %v770_v43 = vpop.eup %769  ;;  %640 = vst.msk [vmem:[%s1194_s3 + $0xb8] sm:$0xff] %vm33_vm0, %v768_v40  ;;  %789 = vrcp.f32 %v567_v37  ;;  %v463_v46 = vsub.f32 0.0, %v425_v42 }
  0xfa   :  { %v772_v45 = vpop.eup %771  ;;  %639 = vst.msk [vmem:[%s1194_s3 + $0xb0] sm:$0xff] %vm33_vm0, %v770_v43  ;;  %791 = vrcp.f32 %v570_v41  ;;  %v539_v28 = vmul.f32 1.442695, %v464_v44 }
  0xfb   :  { %v774_v47 = vpop.eup %773  ;;  %v569_v48 = vadd.f32 1.0, %v772_v45  ;;  %793 = vpow2.f32 %v533_v38  ;;  %v537_v51 = vmul.f32 1.442695, %v463_v46 }
  0xfc   :  { %v776_v49 = vpop.eup %775  ;;  %v572_v50 = vadd.f32 1.0, %v774_v47 }
  0xfd   :  { %v778_v52 = vpop.eup %777  ;;  %642 = vst.msk [vmem:[%s1194_s3 + $0xc8] sm:$0xff] %vm33_vm0, %v776_v49  ;;  %795 = vrcp.f32 %v569_v48 }
  0xfe   :  { %v780_v53 = vpop.eup %779  ;;  %641 = vst.msk [vmem:[%s1194_s3 + $0xc0] sm:$0xff] %vm33_vm0, %v778_v52  ;;  %797 = vrcp.f32 %v572_v50 }
  0xff   :  { %v782_v54 = vpop.eup %781  ;;  %v571_v55 = vadd.f32 1.0, %v780_v53  ;;  %799 = vpow2.f32 %v539_v28 }
 0x100   :  { %v784_v56 = vpop.eup %783  ;;  %644 = vst.msk [vmem:[%s1194_s3 + $0xd8] sm:$0xff] %vm33_vm0, %v782_v54  ;;  %801 = vpow2.f32 %v537_v51 }
 0x101   :  { %v786_v57 = vpop.eup %785  ;;  %803 = vrcp.f32 %v571_v55  ;;  %v574_v58 = vadd.f32 1.0, %v784_v56 }
 0x102   :  { %v788_v59 = vpop.eup %787  ;;  %v573_v60 = vadd.f32 1.0, %v786_v57 }
 0x103   :  { %v790_v61 = vpop.eup %789  ;;  %805 = vrcp.f32 %v574_v58  ;;  %v576_v62 = vadd.f32 1.0, %v788_v59 }
 0x104   :  { %v792_v63 = vpop.eup %791  ;;  %643 = vst.msk [vmem:[%s1194_s3 + $0xd0] sm:$0xff] %vm33_vm0, %v790_v61  ;;  %807 = vrcp.f32 %v573_v60 }
 0x105   :  { %v794_v0 = vpop.eup %793  ;;  %646 = vst.msk [vmem:[%s1194_s3 + $0xe8] sm:$0xff] %vm33_vm0, %v792_v63  ;;  %809 = vrcp.f32 %v576_v62 }
 0x106   :  { %v575_v1 = vadd.f32 1.0, %v794_v0 }
 0x107   :  { %v796_v3 = vpop.eup %795 }
 0x108   :  { %v798_v4 = vpop.eup %797  ;;  %645 = vst.msk [vmem:[%s1194_s3 + $0xe0] sm:$0xff] %vm33_vm0, %v796_v3  ;;  %811 = vrcp.f32 %v575_v1 }
 0x109   :  { %v800_v5 = vpop.eup %799  ;;  %648 = vst.msk [vmem:[%s1194_s3 + $0xf8] sm:$0xff] %vm33_vm0, %v798_v4 }
 0x10a   :  { %v802_v6 = vpop.eup %801  ;;  %v578_v7 = vadd.f32 1.0, %v800_v5 }
 0x10b   :  { %v804_v8 = vpop.eup %803  ;;  %v577_v9 = vadd.f32 1.0, %v802_v6 }
 0x10c   :  { %647 = vst.msk [vmem:[%s1194_s3 + $0xf0] sm:$0xff] %vm33_vm0, %v804_v8  ;;  %813 = vrcp.f32 %v578_v7 }
 0x10d   :  { %v806_v10 = vpop.eup %805  ;;  %815 = vrcp.f32 %v577_v9 }
 0x10e   :  { %v808_v11 = vpop.eup %807  ;;  %650 = vst.msk [vmem:[%s1194_s3 + $0x108] sm:$0xff] %vm33_vm0, %v806_v10 }
 0x10f   :  { %v810_v12 = vpop.eup %809  ;;  %649 = vst.msk [vmem:[%s1194_s3 + $0x100] sm:$0xff] %vm33_vm0, %v808_v11 }
 0x110   :  { %652 = vst.msk [vmem:[%s1194_s3 + $0x118] sm:$0xff] %vm33_vm0, %v810_v12 }
 0x112   :  { %v812_v13 = vpop.eup %811 }
 0x113   :  { %651 = vst.msk [vmem:[%s1194_s3 + $0x110] sm:$0xff] %vm33_vm0, %v812_v13 }
 0x116   :  { %v814_v14 = vpop.eup %813 }
 0x117   :  { %v816_v15 = vpop.eup %815  ;;  %654 = vst.msk [vmem:[%s1194_s3 + $0x128] sm:$0xff] %vm33_vm0, %v814_v14 }
 0x118   :  { %653 = vst.msk [vmem:[%s1194_s3 + $0x120] sm:$0xff] %vm33_vm0, %v816_v15 }
 0x119   :  { %659 = vsyncpa [#allocation5], 1 }

</bundles_post_ra>
